<compile_context>
chip_gen: v7x
topology: tpu7x:2x2x1
jax: 0.10.0
libtpu: 0.0.40
codegen_flags: <defaults>
</compile_context>

<pallas_src>
import functools

import jax
import jax.numpy as jnp
from jax.experimental import pallas as pl
from jax.experimental.pallas import tpu as pltpu


def _pick_chunk(d_main: int) -> int:
    """Largest multiple of 128 (<= 1024) that evenly divides d_main."""
    if d_main == 0:
        return 0
    for c in (1024, 896, 768, 640, 512, 384, 256, 128):
        if d_main % c == 0:
            return c
    return 128  # unreachable: d_main is always a multiple of 128


def _make_kernel(d: int, chunk: int, n_full: int, rem: int):
    """Build a kernel specialized to the static D-chunking plan.

    d       : full feature dim
    chunk   : width of each full chunk (multiple of 128), 0 if none
    n_full  : number of full chunks (n_full * chunk == d - rem)
    rem     : leftover lanes (< 128), handled with a single small slice
    """

    def kernel(x1_ref, x2_ref, w_ref, o_ref):
        tb = x1_ref.shape[0]

        def weighted_chunk(start, width):
            # DMA'd narrow; cast to f32 in-vreg (v5e VPU has no bf16).
            x1c = x1_ref[:, pl.ds(start, width)].astype(jnp.float32)
            x2c = x2_ref[:, pl.ds(start, width)].astype(jnp.float32)
            wc = w_ref[:, pl.ds(start, width)].astype(jnp.float32)
            return x1c * x2c * wc                      # (tb, width), VPU only

        def lane_fold(prod):
            # Fold a (tb, k*128) product to a (tb, 128) partial with static,
            # lane-aligned slices (pure VPU adds; XLU only at the very end).
            part = prod[:, 0:128]
            for g in range(1, chunk // 128):
                part = part + prod[:, g * 128:(g + 1) * 128]
            return part

        total = jnp.zeros((tb, 1), jnp.float32)

        if n_full == 1:
            part = lane_fold(weighted_chunk(0, chunk))
            total = total + jnp.sum(part, axis=-1, keepdims=True)
        elif n_full > 1:
            def body(c, acc):
                start = pl.multiple_of(c * chunk, chunk)
                return acc + lane_fold(weighted_chunk(start, chunk))

            acc = jax.lax.fori_loop(
                0, n_full, body, jnp.zeros((tb, 128), jnp.float32))
            total = total + jnp.sum(acc, axis=-1, keepdims=True)

        if rem:
            prod_r = weighted_chunk(d - rem, rem)      # static start, tiny
            total = total + jnp.sum(prod_r, axis=-1, keepdims=True)

        o_ref[...] = total.astype(o_ref.dtype)

    return kernel


def diagonal_bilinear(x1: jax.Array, x2: jax.Array, w: jax.Array,
                      *, max_block_b: int = 512,
                      input_vmem_budget: int = 28 * 1024 * 1024) -> jax.Array:
    """x1, x2: (batch, dim); w: (1, dim) -- nn.Linear(dim, 1).weight layout.

    Returns (batch, 1) = (x1 * x2) @ w.T
    """
    b, d = x1.shape
    assert x2.shape == (b, d)
    assert w.shape == (1, d)

    itemsize = jnp.dtype(x1.dtype).itemsize
    # Sublane tile multiple per dtype width (f32: 8, bf16: 16, int8/fp8: 32).
    sub = {4: 8, 2: 16, 1: 32}.get(itemsize, 8)

    # ---- Budget-driven batch tile: 2 inputs x 2 pipeline buffers per row. ----
    per_row_bytes = 2 * 2 * d * itemsize
    tb_budget = max(sub, (input_vmem_budget // per_row_bytes) // sub * sub)
    tb = min(max_block_b, tb_budget)

    if b <= tb:
        if b >= 256 and b >= 2 * sub:
            # Split into >= 2 tiles so the "parallel" axis can shard across
            # v7x's two TensorCores (a single grid step would idle one core).
            half = -(-b // 2)
            tb = -(-half // sub) * sub
        else:
            tb = b  # single full-array block (full-dim block is always legal)
    grid = (pl.cdiv(b, tb),)

    # ---- Static D-chunking plan (bounds in-kernel f32 temporaries). ----
    d_main = (d // 128) * 128
    rem = d - d_main
    chunk = _pick_chunk(d_main)
    n_full = d_main // chunk if chunk else 0

    kernel = _make_kernel(d, chunk, n_full, rem)

    cost = pl.CostEstimate(
        flops=3 * b * d,                                   # 2 muls + 1 add / elem
        transcendentals=0,
        bytes_accessed=(2 * b * d + d + b) * itemsize,
    )

    return pl.pallas_call(
        kernel,
        out_shape=jax.ShapeDtypeStruct((b, 1), x1.dtype),
        grid_spec=pltpu.PrefetchScalarGridSpec(
            num_scalar_prefetch=0,
            grid=grid,
            in_specs=[
                pl.BlockSpec((tb, d), lambda i: (i, 0)),   # x1 batch tile
                pl.BlockSpec((tb, d), lambda i: (i, 0)),   # x2 batch tile
                pl.BlockSpec((1, d), lambda i: (0, 0)),    # weight, resident
            ],
            out_specs=pl.BlockSpec((tb, 1), lambda i: (i, 0)),
        ),
        compiler_params=pltpu.CompilerParams(
            dimension_semantics=("parallel",),
            vmem_limit_bytes=40 * 1024 * 1024,
        ),
        cost_estimate=cost,
    )(x1, x2, w)


def _reference(x1, x2, w):
    return (x1.astype(jnp.float32) * x2.astype(jnp.float32)) @ w.astype(
        jnp.float32).T


if __name__ == "__main__":
    key = jax.random.PRNGKey(0)

    def make_inputs(key, batch, dim, dtype=jnp.float32):
        k1, k2, kw = jax.random.split(key, 3)
        x1 = jax.random.normal(k1, (batch, dim), dtype=dtype)
        x2 = jax.random.normal(k2, (batch, dim), dtype=dtype)
        # Deterministic init mirroring nn.Linear(dim, 1, bias=False):
        # weight ~ U(-1/sqrt(dim), 1/sqrt(dim)), shape (1, dim).
        bound = 1.0 / jnp.sqrt(jnp.float32(dim))
        w = jax.random.uniform(kw, (1, dim), minval=-bound, maxval=bound,
                               dtype=dtype)
        return x1, x2, w

    # Case 1: small shape (single block, single D chunk / remainder-only path).
    x1, x2, w = make_inputs(key, batch=8, dim=32)
    out = diagonal_bilinear(x1, x2, w)
    jax.block_until_ready(out)
    ref = _reference(x1, x2, w)
    assert out.shape == (8, 1)
    assert jnp.allclose(out.astype(jnp.float32), ref, atol=1e-5, rtol=1e-5)

    # Case 2: exercises multi-tile batch split, the fori_loop over D chunks,
    # and the (<128) remainder lanes (dim = 17*128 + 32).
    key2 = jax.random.PRNGKey(0)
    x1b, x2b, wb = make_inputs(key2, batch=272, dim=2208)
    outb = diagonal_bilinear(x1b, x2b, wb)
    jax.block_until_ready(outb)
    refb = _reference(x1b, x2b, wb)
    assert outb.shape == (272, 1)
    assert jnp.allclose(outb.astype(jnp.float32), refb, atol=1e-4, rtol=1e-4)

    print("KERNEL_OK")
</pallas_src>

<mosaic_0001>
module attributes {stable_mosaic.version = 11 : i64} {
  func.func @kernel(%arg0: i32, %arg1: memref<8x32xf32, #tpu.memory_space<vmem>>, %arg2: memref<8x32xf32, #tpu.memory_space<vmem>>, %arg3: memref<1x32xf32, #tpu.memory_space<vmem>>, %arg4: memref<8x1xf32, #tpu.memory_space<vmem>>) attributes {dimension_semantics = [#tpu.dimension_semantics<parallel>], iteration_bounds = array<i64: 1>, scalar_prefetch = 0 : i64, scratch_operands = 0 : i64, tpu.core_type = #tpu.core_type<tc>, window_params = [{transform_indices = @transform_0, window_bounds = array<i64: 8, 32>}, {transform_indices = @transform_1, window_bounds = array<i64: 8, 32>}, {pipeline_mode = #tpu.pipeline_mode<synchronous>, transform_indices = @transform_2, window_bounds = array<i64: 1, 32>}, {transform_indices = @transform_3, window_bounds = array<i64: 8, 1>}]} {
    %cst = arith.constant 0.000000e+00 : f32
    %0 = vector.broadcast %cst : f32 to vector<8x1xf32>
    %c0 = arith.constant 0 : index
    %c0_0 = arith.constant 0 : index
    %1 = vector.load %arg1[%c0, %c0_0] : memref<8x32xf32, #tpu.memory_space<vmem>>, vector<8x32xf32>
    %c0_1 = arith.constant 0 : index
    %c0_2 = arith.constant 0 : index
    %2 = vector.load %arg2[%c0_1, %c0_2] : memref<8x32xf32, #tpu.memory_space<vmem>>, vector<8x32xf32>
    %c0_3 = arith.constant 0 : index
    %c0_4 = arith.constant 0 : index
    %3 = vector.load %arg3[%c0_3, %c0_4] : memref<1x32xf32, #tpu.memory_space<vmem>>, vector<1x32xf32>
    %4 = arith.mulf %1, %2 : vector<8x32xf32>
    %5 = vector.broadcast %3 : vector<1x32xf32> to vector<8x32xf32>
    %6 = arith.mulf %4, %5 : vector<8x32xf32>
    %cst_5 = arith.constant dense<0.000000e+00> : vector<8xf32>
    %7 = vector.multi_reduction <add>, %6, %cst_5 [1] : vector<8x32xf32> to vector<8xf32>
    %8 = vector.shape_cast %7 : vector<8xf32> to vector<8x1xf32>
    %9 = arith.addf %0, %8 : vector<8x1xf32>
    %c0_6 = arith.constant 0 : index
    %c0_7 = arith.constant 0 : index
    %10 = vector.load %arg4[%c0_6, %c0_7] : memref<8x1xf32, #tpu.memory_space<vmem>>, vector<8x1xf32>
    tpu.vector_store %arg4[%c0_6, %c0_7], %9 {strides = array<i32>} : memref<8x1xf32, #tpu.memory_space<vmem>>, vector<8x1xf32>,
    return
  }
  func.func @transform_0(%arg0: i32) -> (i32, i32) {
    %c0_i32 = arith.constant 0 : i32
    %c0_i32_0 = arith.constant 0 : i32
    return %arg0, %c0_i32 : i32, i32
  }
  func.func @transform_1(%arg0: i32) -> (i32, i32) {
    %c0_i32 = arith.constant 0 : i32
    %c0_i32_0 = arith.constant 0 : i32
    return %arg0, %c0_i32 : i32, i32
  }
  func.func @transform_2(%arg0: i32) -> (i32, i32) {
    %c0_i32 = arith.constant 0 : i32
    %c0_i32_0 = arith.constant 0 : i32
    %c0_i32_1 = arith.constant 0 : i32
    return %c0_i32, %c0_i32_0 : i32, i32
  }
  func.func @transform_3(%arg0: i32) -> (i32, i32) {
    %c0_i32 = arith.constant 0 : i32
    %c0_i32_0 = arith.constant 0 : i32
    return %arg0, %c0_i32 : i32, i32
  }
}

</mosaic_0001>

<bundles_post_ra>
// kernel: tpu_custom_call.1
= control target key start
LH: loop header
LB: loop body
LE: loop exit
PB: predicated region body
PF: predicated region fallthrough
CT: control target
= control target key end

     0   :  { %8 = vsyncpa [#allocation3], 0  ;;  %s165_s0 = inlined_call_operand.hbm [shape: f32[8,32], index: 0, kind: input, shape index: {}]   ;;  %s166_s1 = inlined_call_operand.hbm [shape: f32[8,32], index: 1, kind: input, shape index: {}]   ;;  %s167_s2 = inlined_call_operand.vmem [shape: f32[1,32], index: 2, kind: input, shape index: {}]   ;;  %s168_s3 = inlined_call_operand.vmem [shape: f32[8,1], index: 3, kind: output, shape index: {}]  }
   0x1   :  { %9 = vsyncpa [#allocation5], 0  ;;  %s113_s12 = smov [#allocation2]   ;;  %s114_s14 = smov [#allocation4]  }
   0x2   :  { %s16_s13 = sshll.u32 %s113_s12, 4  ;;  %s26_s15 = sshll.u32 %s114_s14, 4  ;;  %s17_s13 = int_to_ptr.vmem [resolvable:$true] %s16_s13  ;;  %s27_s15 = int_to_ptr.vmem [resolvable:$true] %s26_s15 }
   0x3   :  { %s65_s18 = scalar_lea.hbm %s165_s0, 128 }
   0x4   :  { %p66_p0 = scmp.ne.s32.totalorder %s165_s0, %s65_s18  ;;  %p69_p1 = scmp.lt.u32.totalorder %s65_s18, %s165_s0 }
   0x6   :  { %p71_p2 = pnand %p69_p1, %p66_p0 }
   0x8   :  { %74 = shalt.err (!%p71_p2)
}
   0x9   :  { %s75_s23 = scalar_lea.vmem %s17_s13, 128  ;;  %p80_p4 = scmp.lt.s32.totalorder %s17_s13, %s17_s13 }
   0xa   :  { %p76_p3 = scmp.ne.s32.totalorder %s17_s13, %s75_s23  ;;  %p81_p5 = scmp.lt.s32.totalorder %s75_s23, %s75_s23 }
   0xc   :  { %p82_p6 = por %p81_p5, %p80_p4 }
   0xe   :  { %p83_p7 = pnand %p82_p6, %p76_p3 }
  0x10   :  { %86 = shalt.err (!%p83_p7)
}
  0x11   :  { %19 = dma.hbm_to_vmem [thread:$0]  %s165_s0, 128, %s17_s13, [#allocation3]  }
  0x12   :  { %s87_s28 = scalar_lea.hbm %s166_s1, 128 }
  0x13   :  { %p88_p8 = scmp.ne.s32.totalorder %s166_s1, %s87_s28  ;;  %p91_p9 = scmp.lt.u32.totalorder %s87_s28, %s166_s1 }
  0x15   :  { %p93_p10 = pnand %p91_p9, %p88_p8 }
  0x17   :  { %96 = shalt.err (!%p93_p10)
}
  0x18   :  { %s97_s6 = scalar_lea.vmem %s27_s15, 128  ;;  %p102_p12 = scmp.lt.s32.totalorder %s27_s15, %s27_s15 }
  0x19   :  { %p98_p11 = scmp.ne.s32.totalorder %s27_s15, %s97_s6  ;;  %p103_p13 = scmp.lt.s32.totalorder %s97_s6, %s97_s6 }
  0x1b   :  { %p104_p0 = por %p103_p13, %p102_p12 }
  0x1d   :  { %p105_p1 = pnand %p104_p0, %p98_p11 }
  0x1f   :  { %108 = shalt.err (!%p105_p1)
}
  0x20   :  { %29 = dma.hbm_to_vmem [thread:$0]  %s166_s1, 128, %s27_s15, [#allocation5]  }
  0x21   :  { %109 = dma.done.wait [#allocation3], 128  }
  0x22   :  { %110 = vsyncadd [#allocation3], 4294967168 }
  0x23   :  { %111 = dma.done.wait [#allocation5], 128  }
  0x24   :  { %112 = vsyncadd [#allocation5], 4294967168  ;;  %v38_v0 = vld [vmem:[#allocation2] sm:$0xff]  ;;  %v39_v1 = vld [vmem:[#allocation4] sm:$0xff]  ;;  %vm49_vm0 = vcmask 261120   ;;  %vm54_vm1 = vcmask 7168  }
  0x25   :  { %v62_v2 = vld [vmem:[%s167_s2] ss:$0 sm:$0xff]  ;;  %v41_v3 = vmul.f32 %v39_v1, %v38_v0 }
  0x27   :  { %v48_v4 = vmul.f32 %v62_v2, %v41_v3 }
  0x29   :  { %v50_v5 = vsel %vm49_vm0, %v48_v4, 0.0 }
  0x2a   :  { %51 = vadd.xlane.f32.xlu0 %v50_v5 }
  0xb7   :  { %v52_v6 = vpop.xlane.xlu0 %51 }
  0xb8   :  { %55 = vst.msk [vmem:[%s168_s3] sm:$0xff] %vm54_vm1, %v52_v6 }
  0xb9   :  { %60 = vsyncpa [#allocation3], 1 }
  0xba   :  { %61 = vsyncpa [#allocation5], 1 }

</bundles_post_ra>
